<compile_context>
chip_gen: v7x
topology: tpu7x:2x2x1
jax: 0.10.0
libtpu: 0.0.40
codegen_flags: <defaults>
</compile_context>

<pallas_src>
import jax
import jax.numpy as jnp
from jax.experimental import pallas as pl
from jax.experimental.pallas import tpu as pltpu


def _dense_metric_kernel(x_ref, linv_ref, out_ref):
    # x_ref:    (tm, D)    row tile of samples (samples on sublanes, features on lanes)
    # linv_ref: (D, D)     L^{-1}, resident across the whole grid
    # out_ref:  (1, 1, tm) lane-dense row of norms for this tile
    #
    # alpha^T[:, n] = Linv @ x[n]: contract the last dim of both operands so the
    # MXU emits (D, tm) with samples on the lane axis.
    alpha_t = jax.lax.dot_general(
        linv_ref[...], x_ref[...],
        dimension_numbers=(((1,), (1,)), ((), ())),
        preferred_element_type=jnp.float32)                    # (D, tm) f32
    nsq = jnp.sum(alpha_t * alpha_t, axis=0, keepdims=True)    # (1, tm), XLU reduce
    out_ref[0] = jnp.sqrt(nsq)                                 # unmasked lane-dense store


def _round_up(a, b):
    return pl.cdiv(a, b) * b


def dense_metric(x, L, *, tm=1024):
    """Pallas implementation of DenseMetric.forward: ||L^{-1} x||_2 over the last dim."""
    D = x.shape[-1]
    batch_shape = x.shape[:-1]
    x2d = x.reshape(-1, D).astype(jnp.float32)
    N = x2d.shape[0]

    # Tile sizing: multiples of 128 rows keep the output store lane-dense;
    # clamp so tiny batches are not over-padded, and keep >= 2 grid steps when
    # there is enough work so the parallel grid axis shards across v7x's 2 TCs.
    tm = min(tm, _round_up(N, 128))
    if N >= 2 * 128:
        tm = min(tm, _round_up(pl.cdiv(N, 2), 128))
    tm = max(tm, 128)
    grid = pl.cdiv(N, tm)
    n_pad = grid * tm
    if n_pad != N:
        x2d = jnp.pad(x2d, ((0, n_pad - N), (0, 0)))

    # Fold the triangular solve against the fixed parameter into Linv = L^{-1}.
    linv = jax.scipy.linalg.solve_triangular(
        L.astype(jnp.float32), jnp.eye(D, dtype=jnp.float32), lower=True)

    out = pl.pallas_call(
        _dense_metric_kernel,
        out_shape=jax.ShapeDtypeStruct((grid, 1, tm), jnp.float32),
        grid_spec=pltpu.PrefetchScalarGridSpec(
            num_scalar_prefetch=0,
            grid=(grid,),
            in_specs=[
                pl.BlockSpec((tm, D), lambda i: (i, 0)),   # row tile of x
                pl.BlockSpec((D, D), lambda i: (0, 0)),    # full L^{-1}, reused
            ],
            out_specs=pl.BlockSpec((1, 1, tm), lambda i: (i, 0, 0)),
        ),
        compiler_params=pltpu.CompilerParams(
            dimension_semantics=("parallel",)),
    )(x2d, linv)

    return out.reshape(-1)[:N].reshape(batch_shape)


if __name__ == "__main__":
    key = jax.random.PRNGKey(0)
    k1, k2 = jax.random.split(key)

    B, S, D = 2, 8, 32            # x: [2, 8, 32], norm taken over D
    x = jax.random.normal(k1, (B, S, D), dtype=jnp.float32)

    # Deterministic SPD covariance -> lower Cholesky factor L (the module parameter).
    A = jax.random.normal(k2, (D, D), dtype=jnp.float32)
    cov = A @ A.T + D * jnp.eye(D, dtype=jnp.float32)
    L = jnp.linalg.cholesky(cov)

    out = dense_metric(x, L)
    out = jax.block_until_ready(out)

    # Pure-JAX reference: alpha = triangular_solve(L, x), then L2 norm over D.
    alpha_ref = jax.scipy.linalg.solve_triangular(
        L, x.reshape(-1, D).T, lower=True).T
    ref = jnp.sqrt(jnp.sum(alpha_ref * alpha_ref, axis=-1)).reshape(B, S)

    assert out.shape == (B, S)
    assert jnp.allclose(out, ref, rtol=1e-4, atol=1e-4)
    print("KERNEL_OK")
</pallas_src>

<mosaic_0001>
module attributes {stable_mosaic.version = 11 : i64} {
  func.func @_dense_metric_kernel(%arg0: i32, %arg1: memref<128x32xf32, #tpu.memory_space<vmem>>, %arg2: memref<32x32xf32, #tpu.memory_space<vmem>>, %arg3: memref<1x1x128xf32, #tpu.memory_space<vmem>>) attributes {dimension_semantics = [#tpu.dimension_semantics<parallel>], iteration_bounds = array<i64: 1>, scalar_prefetch = 0 : i64, scratch_operands = 0 : i64, tpu.core_type = #tpu.core_type<tc>, window_params = [{transform_indices = @transform_0, window_bounds = array<i64: 128, 32>}, {pipeline_mode = #tpu.pipeline_mode<synchronous>, transform_indices = @transform_1, window_bounds = array<i64: 32, 32>}, {transform_indices = @transform_2, window_bounds = array<i64: 1, 1, 128>}]} {
    %c0 = arith.constant 0 : index
    %c0_0 = arith.constant 0 : index
    %0 = vector.load %arg2[%c0, %c0_0] : memref<32x32xf32, #tpu.memory_space<vmem>>, vector<32x32xf32>
    %c0_1 = arith.constant 0 : index
    %c0_2 = arith.constant 0 : index
    %1 = vector.load %arg1[%c0_1, %c0_2] : memref<128x32xf32, #tpu.memory_space<vmem>>, vector<128x32xf32>
    %cst = arith.constant dense<0.000000e+00> : vector<32x128xf32>
    %2 = tpu.matmul %0, %1, %cst {dimension_numbers = #tpu.dot_dimension_numbers<[1], [1], [0], [0], [0, 0, 1, 0], [], []>} : vector<32x32xf32>, vector<128x32xf32>, vector<32x128xf32> -> vector<32x128xf32>
    %3 = arith.mulf %2, %2 : vector<32x128xf32>
    %cst_3 = arith.constant dense<0.000000e+00> : vector<128xf32>
    %4 = vector.multi_reduction <add>, %3, %cst_3 [0] : vector<32x128xf32> to vector<128xf32>
    %5 = vector.shape_cast %4 : vector<128xf32> to vector<1x128xf32>
    %6 = math.sqrt %5 : vector<1x128xf32>
    %c0_4 = arith.constant 0 : index
    %c0_5 = arith.constant 0 : index
    %c0_6 = arith.constant 0 : index
    %7 = vector.load %arg3[%c0_4, %c0_5, %c0_6] : memref<1x1x128xf32, #tpu.memory_space<vmem>>, vector<1x1x128xf32>
    %8 = vector.shape_cast %7 : vector<1x1x128xf32> to vector<1x128xf32>
    %9 = vector.shape_cast %6 : vector<1x128xf32> to vector<1x1x128xf32>
    tpu.vector_store %arg3[%c0_4, %c0_5, %c0_6], %9 {strides = array<i32>} : memref<1x1x128xf32, #tpu.memory_space<vmem>>, vector<1x1x128xf32>,
    return
  }
  func.func @transform_0(%arg0: i32) -> (i32, i32) {
    %c0_i32 = arith.constant 0 : i32
    %c0_i32_0 = arith.constant 0 : i32
    return %arg0, %c0_i32 : i32, i32
  }
  func.func @transform_1(%arg0: i32) -> (i32, i32) {
    %c0_i32 = arith.constant 0 : i32
    %c0_i32_0 = arith.constant 0 : i32
    %c0_i32_1 = arith.constant 0 : i32
    return %c0_i32, %c0_i32_0 : i32, i32
  }
  func.func @transform_2(%arg0: i32) -> (i32, i32, i32) {
    %c0_i32 = arith.constant 0 : i32
    %c0_i32_0 = arith.constant 0 : i32
    %c0_i32_1 = arith.constant 0 : i32
    return %arg0, %c0_i32, %c0_i32_0 : i32, i32, i32
  }
}

</mosaic_0001>

<bundles_post_ra>
// kernel: tpu_custom_call.1
= control target key start
LH: loop header
LB: loop body
LE: loop exit
PB: predicated region body
PF: predicated region fallthrough
CT: control target
= control target key end

     0   :  { %vm32_vm0 = vcmask 261120   ;;  %s544_s0 = inlined_call_operand.vmem [shape: f32[128,32], index: 0, kind: input, shape index: {}]   ;;  %s545_s1 = inlined_call_operand.vmem [shape: f32[32,32], index: 1, kind: input, shape index: {}]   ;;  %s546_s2 = inlined_call_operand.hbm [shape: f32[1,1,128], index: 2, kind: output, shape index: {}]  }
   0x1   :  { %v16_v0 = vld [vmem:[%s544_s0] sm:$0xff]  ;;  %v17_v1 = vld [vmem:[%s544_s0 + $0x8] sm:$0xff]  ;;  %v18_v2 = vld [vmem:[%s544_s0 + $0x10] sm:$0xff] }
   0x2   :  { %v291_v3 = vpack.c.bf16 %v17_v1, %v16_v0  ;;  %vm409_vm1 = vmpackc.low %vm32_vm0, %vm32_vm0  ;;  %v19_v5 = vld [vmem:[%s544_s0 + $0x18] sm:$0xff]  ;;  %v12_v7 = vld [vmem:[%s545_s1] sm:$0xff] }
   0x3   :  { %v297_v6 = vpack.c.bf16 %v19_v5, %v18_v2  ;;  %v20_v8 = vld [vmem:[%s544_s0 + $0x20] sm:$0xff]  ;;  %v21_v9 = vld [vmem:[%s544_s0 + $0x28] sm:$0xff]  ;;  %285 = vmatprep.mubr.msk.f32.mxu0 %vm32_vm0, %v12_v7  ;;  %v14_v10 = vld [vmem:[%s545_s1 + $0x10] sm:$0xff] }
   0x4   :  { %293 = vmatprep.subr.msk.bf16.mxu0 %vm409_vm1, %v291_v3  ;;  %339 = vmatprep.subr.msk.bf16.mxu1 %vm409_vm1, %v291_v3 }
   0x5   :  { %296 = vmatpush3.bf16.xpose.msk.msra.mxu0 %vm409_vm1, %v291_v3  ;;  %347 = vmatpush3.bf16.xpose.msk.msra.mxu1 %vm409_vm1, %v291_v3 }
   0x6   :  { %299 = vmatprep.subr.msk.bf16.mxu0 %vm409_vm1, %v297_v6  ;;  %340 = vmatprep.subr.msk.bf16.mxu1 %vm409_vm1, %v297_v6 }
   0x7   :  { %288 = vmatprep.mubr.msk.f32.mxu1 %vm32_vm0, %v14_v10 }
   0x8   :  { %7 = vsyncpa [#allocation3], 0  ;;  %v303_v11 = vpack.c.bf16 %v21_v9, %v20_v8  ;;  %v22_v12 = vld [vmem:[%s544_s0 + $0x30] sm:$0xff]  ;;  %v23_v13 = vld [vmem:[%s544_s0 + $0x38] sm:$0xff] }
   0x9   :  { %v309_v14 = vpack.c.bf16 %v23_v13, %v22_v12  ;;  %v24_v15 = vld [vmem:[%s544_s0 + $0x40] sm:$0xff]  ;;  %v25_v16 = vld [vmem:[%s544_s0 + $0x48] sm:$0xff]  ;;  %v26_v18 = vld [vmem:[%s544_s0 + $0x50] sm:$0xff] }
   0xa   :  { %v315_v17 = vpack.c.bf16 %v25_v16, %v24_v15  ;;  %v27_v19 = vld [vmem:[%s544_s0 + $0x58] sm:$0xff]  ;;  %v28_v21 = vld [vmem:[%s544_s0 + $0x60] sm:$0xff]  ;;  %v29_v22 = vld [vmem:[%s544_s0 + $0x68] sm:$0xff] }
   0xb   :  { %v321_v20 = vpack.c.bf16 %v27_v19, %v26_v18  ;;  %v327_v23 = vpack.c.bf16 %v29_v22, %v28_v21  ;;  %v30_v24 = vld [vmem:[%s544_s0 + $0x70] sm:$0xff]  ;;  %v31_v25 = vld [vmem:[%s544_s0 + $0x78] sm:$0xff]  ;;  %v13_v27 = vld [vmem:[%s545_s1 + $0x8] sm:$0xff] }
   0xc   :  { %v333_v26 = vpack.c.bf16 %v31_v25, %v30_v24  ;;  %v15_v28 = vld [vmem:[%s545_s1 + $0x18] sm:$0xff]  ;;  %s382_s1 = smov [#allocation2]  }
   0xd   :  { %302 = vmatpush3.bf16.xpose.msk.msra.mxu0 %vm409_vm1, %v297_v6  ;;  %348 = vmatpush3.bf16.xpose.msk.msra.mxu1 %vm409_vm1, %v297_v6  ;;  %s205_s20 = sshll.u32 %s382_s1, 4  ;;  %s206_s20 = int_to_ptr.vmem [resolvable:$true] %s205_s20 }
   0xe   :  { %305 = vmatprep.subr.msk.bf16.mxu0 %vm409_vm1, %v303_v11  ;;  %341 = vmatprep.subr.msk.bf16.mxu1 %vm409_vm1, %v303_v11  ;;  %s358_s21 = scalar_lea.vmem %s206_s20, 16  ;;  %s362_s22 = scalar_lea.vmem %s206_s20, 32 }
   0xf   :  { %p359_p0 = scmp.ne.s32.totalorder %s206_s20, %s358_s21  ;;  %p363_p1 = scmp.lt.s32.totalorder %s206_s20, %s206_s20 }
  0x10   :  { %p364_p2 = scmp.lt.s32.totalorder %s362_s22, %s358_s21 }
  0x12   :  { %p365_p3 = por %p364_p2, %p363_p1 }
  0x14   :  { %p366_p4 = pnand %p365_p3, %p359_p0 }
  0x15   :  { %308 = vmatpush3.bf16.xpose.msk.msra.mxu0 %vm409_vm1, %v303_v11  ;;  %349 = vmatpush3.bf16.xpose.msk.msra.mxu1 %vm409_vm1, %v303_v11 }
  0x16   :  { %311 = vmatprep.subr.msk.bf16.mxu0 %vm409_vm1, %v309_v14  ;;  %342 = vmatprep.subr.msk.bf16.mxu1 %vm409_vm1, %v309_v14 }
  0x1d   :  { %314 = vmatpush3.bf16.xpose.msk.msra.mxu0 %vm409_vm1, %v309_v14  ;;  %350 = vmatpush3.bf16.xpose.msk.msra.mxu1 %vm409_vm1, %v309_v14 }
  0x1e   :  { %317 = vmatprep.subr.msk.bf16.mxu0 %vm409_vm1, %v315_v17  ;;  %343 = vmatprep.subr.msk.bf16.mxu1 %vm409_vm1, %v315_v17 }
  0x25   :  { %320 = vmatpush3.bf16.xpose.msk.msra.mxu0 %vm409_vm1, %v315_v17  ;;  %351 = vmatpush3.bf16.xpose.msk.msra.mxu1 %vm409_vm1, %v315_v17 }
  0x26   :  { %323 = vmatprep.subr.msk.bf16.mxu0 %vm409_vm1, %v321_v20  ;;  %344 = vmatprep.subr.msk.bf16.mxu1 %vm409_vm1, %v321_v20 }
  0x2d   :  { %326 = vmatpush3.bf16.xpose.msk.msra.mxu0 %vm409_vm1, %v321_v20  ;;  %352 = vmatpush3.bf16.xpose.msk.msra.mxu1 %vm409_vm1, %v321_v20 }
  0x2e   :  { %329 = vmatprep.subr.msk.bf16.mxu0 %vm409_vm1, %v327_v23  ;;  %345 = vmatprep.subr.msk.bf16.mxu1 %vm409_vm1, %v327_v23 }
  0x35   :  { %332 = vmatpush3.bf16.xpose.msk.msra.mxu0 %vm409_vm1, %v327_v23  ;;  %353 = vmatpush3.bf16.xpose.msk.msra.mxu1 %vm409_vm1, %v327_v23 }
  0x36   :  { %335 = vmatprep.subr.msk.bf16.mxu0 %vm409_vm1, %v333_v26  ;;  %346 = vmatprep.subr.msk.bf16.mxu1 %vm409_vm1, %v333_v26 }
  0x3d   :  { %338 = vmatpush3.bf16.xpose.msk.msra.mxu0 %vm409_vm1, %v333_v26  ;;  %354 = vmatpush3.bf16.xpose.msk.msra.mxu1 %vm409_vm1, %v333_v26 }
  0x44   :  { %286 = vmatmul.mubr.msk.f32.vlgmr.msra.gmra.mrb[0].mxu0 %vm32_vm0, %v13_v27  ;;  %289 = vmatmul.mubr.msk.f32.vlgmr.msra.gmra.mrb[0].mxu1 %vm32_vm0, %v15_v28 }
 0x117   :  { %v287_v29 = vpop.f32.mrb[0].mxu0  ;;  %v290_v30 = vpop.f32.mrb[0].mxu1 }
 0x118   :  { %v179_v31 = vmul.f32 %v287_v29, %v287_v29  ;;  %v159_v32 = vpop.f32.mrb[1].mxu0  ;;  %v169_v33 = vpop.f32.mrb[1].mxu1  ;;  %v181_v37 = vmul.f32 %v290_v30, %v290_v30 }
 0x119   :  { %v178_v34 = vmul.f32 %v159_v32, %v159_v32  ;;  %v180_v35 = vmul.f32 %v169_v33, %v169_v33 }
 0x11b   :  { %v182_v36 = vadd.f32 %v179_v31, %v178_v34 }
 0x11d   :  { %v183_v38 = vadd.f32 %v182_v36, %v180_v35 }
 0x11f   :  { %v184_v39 = vadd.f32 %v183_v38, %v181_v37 }
 0x121   :  { %v185_v40 = vrot.slane %v184_v39, 4 }
 0x123   :  { %v186_v41 = vadd.f32 %v185_v40, %v184_v39 }
 0x125   :  { %v187_v42 = vrot.slane %v186_v41, 2 }
 0x127   :  { %v188_v43 = vadd.f32 %v187_v42, %v186_v41 }
 0x129   :  { %v189_v44 = vrot.slane %v188_v43, 1 }
 0x12b   :  { %v190_v45 = vadd.f32 %v189_v44, %v188_v43 }
 0x12d   :  { %356 = vrsqrt.f32 %v190_v45  ;;  %vm193_vm2 = vcmp.eq.f32.partialorder %v190_v45, inf  ;;  %v196_v48 = vand.u32 2147483648, %v190_v45  ;;  %vm195_vm3 = vcmp.eq.f32.partialorder %v190_v45, 0.0 }
 0x137   :  { %v357_v46 = vpop.eup %356 }
 0x138   :  { %v192_v47 = vmul.f32 %v357_v46, %v190_v45 }
 0x13a   :  { %v194_v49 = vsel %vm193_vm2, %v190_v45, %v192_v47 }
 0x13b   :  { %v197_v50 = vsel %vm195_vm3, %v196_v48, %v194_v49 }
 0x13c   :  { %198 = vst [vmem:[#allocation2] sm:$0x1] %v197_v50 }
 0x13d   :  { %369 = shalt.err (!%p366_p4)
}
 0x13e   :  { %s370_s25 = scalar_lea.hbm %s546_s2, 16 }
 0x13f   :  { %p371_p5 = scmp.ne.s32.totalorder %s546_s2, %s370_s25  ;;  %p374_p6 = scmp.lt.u32.totalorder %s370_s25, %s546_s2 }
 0x141   :  { %p376_p7 = pnand %p374_p6, %p371_p5 }
 0x143   :  { %379 = shalt.err (!%p376_p7)
}
 0x144   :  { %208 = dma.vmem_to_hbm [thread:$0]  %s206_s20, 16, %s546_s2, [#allocation3]  }
 0x145   :  { %380 = dma.done.wait [#allocation3], 16  }
 0x146   :  { %381 = vsyncadd [#allocation3], 4294967280 }
 0x147   :  { %212 = vsyncpa [#allocation3], 1 }

</bundles_post_ra>
